<compile_context>
chip_gen: v7x
topology: tpu7x:2x2x1
jax: 0.10.0
libtpu: 0.0.40
codegen_flags: <defaults>
</compile_context>

<pallas_src>
import jax
import jax.numpy as jnp
from jax.experimental import pallas as pl
from jax.experimental.pallas import tpu as pltpu


def dqn_kernel(x_ref,
               w1_ref, b1_ref,
               w2_ref, b2_ref,
               w3_ref, b3_ref,
               wf_ref, bf_ref,
               o_ref):
    # x_ref: (input_dim, TILE_N) bf16 — batch on the lane axis.
    # w*_ref: (out_features, in_features) bf16 ; b*_ref: (out_features, 1) f32.
    x = x_ref[...]

    # layer1: Linear(input_dim -> hidden) + ReLU
    h = jnp.dot(w1_ref[...], x, preferred_element_type=jnp.float32) + b1_ref[...]
    h = jnp.maximum(h, 0.0)

    # layer2: Linear(hidden -> hidden) + ReLU
    h = jnp.dot(w2_ref[...], h.astype(jnp.bfloat16),
                preferred_element_type=jnp.float32) + b2_ref[...]
    h = jnp.maximum(h, 0.0)

    # layer3: Linear(hidden -> hidden) + ReLU
    h = jnp.dot(w3_ref[...], h.astype(jnp.bfloat16),
                preferred_element_type=jnp.float32) + b3_ref[...]
    h = jnp.maximum(h, 0.0)

    # final: Linear(hidden -> output_dim) + Sigmoid
    q = jnp.dot(wf_ref[...], h.astype(jnp.bfloat16),
                preferred_element_type=jnp.float32) + bf_ref[...]
    o_ref[...] = jax.nn.sigmoid(q).astype(o_ref.dtype)


def dqn_forward(x, params, *, tile_n=256):
    """x: (n, input_dim) f32. params: weights (out,in) f32, biases (out,1) f32.
    Returns Q values of shape (n, output_dim) in f32."""
    n, input_dim = x.shape
    output_dim = params["wf"].shape[0]

    # Pad the batch up to a multiple of the lane tile and put batch on lanes.
    n_pad = pl.cdiv(n, tile_n) * tile_n
    xT = x.T.astype(jnp.bfloat16)                       # (input_dim, n)
    if n_pad != n:
        xT = jnp.pad(xT, ((0, 0), (0, n_pad - n)))      # (input_dim, n_pad)

    args = (xT,
            params["w1"].astype(jnp.bfloat16), params["b1"],
            params["w2"].astype(jnp.bfloat16), params["b2"],
            params["w3"].astype(jnp.bfloat16), params["b3"],
            params["wf"].astype(jnp.bfloat16), params["bf"])

    def row_map(i):          # streamed operand: walk along the batch axis
        return (0, i)

    def const_map(i):        # resident operand: same block every grid step
        return (0, 0)

    in_specs = [pl.BlockSpec((input_dim, tile_n), row_map)]
    for a in args[1:]:
        in_specs.append(pl.BlockSpec(a.shape, const_map))

    outT = pl.pallas_call(
        dqn_kernel,
        out_shape=jax.ShapeDtypeStruct((output_dim, n_pad), jnp.float32),
        grid=(n_pad // tile_n,),
        in_specs=in_specs,
        out_specs=pl.BlockSpec((output_dim, tile_n), row_map),
        compiler_params=pltpu.CompilerParams(
            dimension_semantics=("parallel",)),
    )(*args)

    return outT[:, :n].T                                # (n, output_dim)


def init_params(key, input_dim, hidden_dim, output_dim):
    """Deterministic synthetic init. Weights in PyTorch (out, in) layout,
    biases as (out, 1)."""
    ks = jax.random.split(key, 8)

    def lin(kw, kb, fan_in, fan_out):
        bound = 1.0 / jnp.sqrt(fan_in)
        w = jax.random.uniform(kw, (fan_out, fan_in), jnp.float32, -bound, bound)
        b = jax.random.uniform(kb, (fan_out, 1), jnp.float32, -bound, bound)
        return w, b

    w1, b1 = lin(ks[0], ks[1], input_dim, hidden_dim)
    w2, b2 = lin(ks[2], ks[3], hidden_dim, hidden_dim)
    w3, b3 = lin(ks[4], ks[5], hidden_dim, hidden_dim)
    wf, bf = lin(ks[6], ks[7], hidden_dim, output_dim)
    return {"w1": w1, "b1": b1, "w2": w2, "b2": b2,
            "w3": w3, "b3": b3, "wf": wf, "bf": bf}


def dqn_reference(x, p):
    """Pure-JAX f32 reference matching the PyTorch module."""
    h = jnp.maximum(x @ p["w1"].T + p["b1"].T, 0.0)
    h = jnp.maximum(h @ p["w2"].T + p["b2"].T, 0.0)
    h = jnp.maximum(h @ p["w3"].T + p["b3"].T, 0.0)
    return jax.nn.sigmoid(h @ p["wf"].T + p["bf"].T)


if __name__ == "__main__":
    input_dim, output_dim, hidden_dim = 16, 4, 32

    key = jax.random.PRNGKey(0)
    k_params, k_x1, k_x2 = jax.random.split(key, 3)
    params = init_params(k_params, input_dim, hidden_dim, output_dim)

    # Main case: RL replay-batch scale (multiple of the 256-row lane tile).
    batch = 512
    x = jax.random.normal(k_x1, (batch, input_dim), jnp.float32)
    out = jax.block_until_ready(dqn_forward(x, params))
    ref = dqn_reference(x, params)
    assert out.shape == (batch, output_dim)
    # bf16 MXU operands with f32 accumulation -> ~1e-2-level diffs vs f32 ref.
    assert jnp.allclose(out, ref, atol=2e-2, rtol=0.0), float(
        jnp.max(jnp.abs(out - ref)))

    # Small / ragged batch exercises the padding path.
    x_small = jax.random.normal(k_x2, (8, input_dim), jnp.float32)
    out_small = jax.block_until_ready(dqn_forward(x_small, params))
    ref_small = dqn_reference(x_small, params)
    assert out_small.shape == (8, output_dim)
    assert jnp.allclose(out_small, ref_small, atol=2e-2, rtol=0.0)

    print("KERNEL_OK")
</pallas_src>

<mosaic_0001>
module attributes {stable_mosaic.version = 11 : i64} {
  func.func @dqn_kernel(%arg0: i32, %arg1: memref<16x256xbf16, #tpu.memory_space<vmem>>, %arg2: memref<32x16xbf16, #tpu.memory_space<vmem>>, %arg3: memref<32x1xf32, #tpu.memory_space<vmem>>, %arg4: memref<32x32xbf16, #tpu.memory_space<vmem>>, %arg5: memref<32x1xf32, #tpu.memory_space<vmem>>, %arg6: memref<32x32xbf16, #tpu.memory_space<vmem>>, %arg7: memref<32x1xf32, #tpu.memory_space<vmem>>, %arg8: memref<4x32xbf16, #tpu.memory_space<vmem>>, %arg9: memref<4x1xf32, #tpu.memory_space<vmem>>, %arg10: memref<4x256xf32, #tpu.memory_space<vmem>>) attributes {dimension_semantics = [#tpu.dimension_semantics<parallel>], iteration_bounds = array<i64: 2>, scalar_prefetch = 0 : i64, scratch_operands = 0 : i64, tpu.core_type = #tpu.core_type<tc>, window_params = [{transform_indices = @transform_0, window_bounds = array<i64: 16, 256>}, {pipeline_mode = #tpu.pipeline_mode<synchronous>, transform_indices = @transform_1, window_bounds = array<i64: 32, 16>}, {pipeline_mode = #tpu.pipeline_mode<synchronous>, transform_indices = @transform_2, window_bounds = array<i64: 32, 1>}, {pipeline_mode = #tpu.pipeline_mode<synchronous>, transform_indices = @transform_3, window_bounds = array<i64: 32, 32>}, {pipeline_mode = #tpu.pipeline_mode<synchronous>, transform_indices = @transform_4, window_bounds = array<i64: 32, 1>}, {pipeline_mode = #tpu.pipeline_mode<synchronous>, transform_indices = @transform_5, window_bounds = array<i64: 32, 32>}, {pipeline_mode = #tpu.pipeline_mode<synchronous>, transform_indices = @transform_6, window_bounds = array<i64: 32, 1>}, {pipeline_mode = #tpu.pipeline_mode<synchronous>, transform_indices = @transform_7, window_bounds = array<i64: 4, 32>}, {pipeline_mode = #tpu.pipeline_mode<synchronous>, transform_indices = @transform_8, window_bounds = array<i64: 4, 1>}, {transform_indices = @transform_9, window_bounds = array<i64: 4, 256>}]} {
    %c0 = arith.constant 0 : index
    %c0_0 = arith.constant 0 : index
    %0 = vector.load %arg1[%c0, %c0_0] : memref<16x256xbf16, #tpu.memory_space<vmem>>, vector<16x256xbf16>
    %c0_1 = arith.constant 0 : index
    %c0_2 = arith.constant 0 : index
    %1 = vector.load %arg2[%c0_1, %c0_2] : memref<32x16xbf16, #tpu.memory_space<vmem>>, vector<32x16xbf16>
    %cst = arith.constant dense<0.000000e+00> : vector<32x256xf32>
    %2 = tpu.matmul %1, %0, %cst {dimension_numbers = #tpu.dot_dimension_numbers<[1], [0], [0], [1], [0, 0, 1, 1], [], []>} : vector<32x16xbf16>, vector<16x256xbf16>, vector<32x256xf32> -> vector<32x256xf32>
    %c0_3 = arith.constant 0 : index
    %c0_4 = arith.constant 0 : index
    %3 = vector.load %arg3[%c0_3, %c0_4] : memref<32x1xf32, #tpu.memory_space<vmem>>, vector<32x1xf32>
    %4 = vector.broadcast %3 : vector<32x1xf32> to vector<32x256xf32>
    %5 = arith.addf %2, %4 : vector<32x256xf32>
    %cst_5 = arith.constant 0.000000e+00 : f32
    %6 = vector.broadcast %cst_5 : f32 to vector<32x256xf32>
    %7 = arith.maximumf %5, %6 : vector<32x256xf32>
    %c0_6 = arith.constant 0 : index
    %c0_7 = arith.constant 0 : index
    %8 = vector.load %arg4[%c0_6, %c0_7] : memref<32x32xbf16, #tpu.memory_space<vmem>>, vector<32x32xbf16>
    %9 = arith.truncf %7 : vector<32x256xf32> to vector<32x256xbf16>
    %cst_8 = arith.constant dense<0.000000e+00> : vector<32x256xf32>
    %10 = tpu.matmul %8, %9, %cst_8 {dimension_numbers = #tpu.dot_dimension_numbers<[1], [0], [0], [1], [0, 0, 1, 1], [], []>} : vector<32x32xbf16>, vector<32x256xbf16>, vector<32x256xf32> -> vector<32x256xf32>
    %c0_9 = arith.constant 0 : index
    %c0_10 = arith.constant 0 : index
    %11 = vector.load %arg5[%c0_9, %c0_10] : memref<32x1xf32, #tpu.memory_space<vmem>>, vector<32x1xf32>
    %12 = vector.broadcast %11 : vector<32x1xf32> to vector<32x256xf32>
    %13 = arith.addf %10, %12 : vector<32x256xf32>
    %cst_11 = arith.constant 0.000000e+00 : f32
    %14 = vector.broadcast %cst_11 : f32 to vector<32x256xf32>
    %15 = arith.maximumf %13, %14 : vector<32x256xf32>
    %c0_12 = arith.constant 0 : index
    %c0_13 = arith.constant 0 : index
    %16 = vector.load %arg6[%c0_12, %c0_13] : memref<32x32xbf16, #tpu.memory_space<vmem>>, vector<32x32xbf16>
    %17 = arith.truncf %15 : vector<32x256xf32> to vector<32x256xbf16>
    %cst_14 = arith.constant dense<0.000000e+00> : vector<32x256xf32>
    %18 = tpu.matmul %16, %17, %cst_14 {dimension_numbers = #tpu.dot_dimension_numbers<[1], [0], [0], [1], [0, 0, 1, 1], [], []>} : vector<32x32xbf16>, vector<32x256xbf16>, vector<32x256xf32> -> vector<32x256xf32>
    %c0_15 = arith.constant 0 : index
    %c0_16 = arith.constant 0 : index
    %19 = vector.load %arg7[%c0_15, %c0_16] : memref<32x1xf32, #tpu.memory_space<vmem>>, vector<32x1xf32>
    %20 = vector.broadcast %19 : vector<32x1xf32> to vector<32x256xf32>
    %21 = arith.addf %18, %20 : vector<32x256xf32>
    %cst_17 = arith.constant 0.000000e+00 : f32
    %22 = vector.broadcast %cst_17 : f32 to vector<32x256xf32>
    %23 = arith.maximumf %21, %22 : vector<32x256xf32>
    %c0_18 = arith.constant 0 : index
    %c0_19 = arith.constant 0 : index
    %24 = vector.load %arg8[%c0_18, %c0_19] : memref<4x32xbf16, #tpu.memory_space<vmem>>, vector<4x32xbf16>
    %25 = arith.truncf %23 : vector<32x256xf32> to vector<32x256xbf16>
    %cst_20 = arith.constant dense<0.000000e+00> : vector<4x256xf32>
    %26 = tpu.matmul %24, %25, %cst_20 {dimension_numbers = #tpu.dot_dimension_numbers<[1], [0], [0], [1], [0, 0, 1, 1], [], []>} : vector<4x32xbf16>, vector<32x256xbf16>, vector<4x256xf32> -> vector<4x256xf32>
    %c0_21 = arith.constant 0 : index
    %c0_22 = arith.constant 0 : index
    %27 = vector.load %arg9[%c0_21, %c0_22] : memref<4x1xf32, #tpu.memory_space<vmem>>, vector<4x1xf32>
    %28 = vector.broadcast %27 : vector<4x1xf32> to vector<4x256xf32>
    %29 = arith.addf %26, %28 : vector<4x256xf32>
    %30 = arith.negf %29 : vector<4x256xf32>
    %31 = math.exp %30 : vector<4x256xf32>
    %cst_23 = arith.constant 1.000000e+00 : f32
    %32 = vector.broadcast %cst_23 : f32 to vector<4x256xf32>
    %33 = arith.addf %32, %31 : vector<4x256xf32>
    %34 = arith.divf %32, %33 : vector<4x256xf32>
    %c0_24 = arith.constant 0 : index
    %c0_25 = arith.constant 0 : index
    %35 = vector.load %arg10[%c0_24, %c0_25] : memref<4x256xf32, #tpu.memory_space<vmem>>, vector<4x256xf32>
    tpu.vector_store %arg10[%c0_24, %c0_25], %34 {strides = array<i32>} : memref<4x256xf32, #tpu.memory_space<vmem>>, vector<4x256xf32>,
    return
  }
  func.func @transform_0(%arg0: i32) -> (i32, i32) {
    %c0_i32 = arith.constant 0 : i32
    %c0_i32_0 = arith.constant 0 : i32
    return %c0_i32, %arg0 : i32, i32
  }
  func.func @transform_1(%arg0: i32) -> (i32, i32) {
    %c0_i32 = arith.constant 0 : i32
    %c0_i32_0 = arith.constant 0 : i32
    %c0_i32_1 = arith.constant 0 : i32
    return %c0_i32, %c0_i32_0 : i32, i32
  }
  func.func @transform_2(%arg0: i32) -> (i32, i32) {
    %c0_i32 = arith.constant 0 : i32
    %c0_i32_0 = arith.constant 0 : i32
    %c0_i32_1 = arith.constant 0 : i32
    return %c0_i32, %c0_i32_0 : i32, i32
  }
  func.func @transform_3(%arg0: i32) -> (i32, i32) {
    %c0_i32 = arith.constant 0 : i32
    %c0_i32_0 = arith.constant 0 : i32
    %c0_i32_1 = arith.constant 0 : i32
    return %c0_i32, %c0_i32_0 : i32, i32
  }
  func.func @transform_4(%arg0: i32) -> (i32, i32) {
    %c0_i32 = arith.constant 0 : i32
    %c0_i32_0 = arith.constant 0 : i32
    %c0_i32_1 = arith.constant 0 : i32
    return %c0_i32, %c0_i32_0 : i32, i32
  }
  func.func @transform_5(%arg0: i32) -> (i32, i32) {
    %c0_i32 = arith.constant 0 : i32
    %c0_i32_0 = arith.constant 0 : i32
    %c0_i32_1 = arith.constant 0 : i32
    return %c0_i32, %c0_i32_0 : i32, i32
  }
  func.func @transform_6(%arg0: i32) -> (i32, i32) {
    %c0_i32 = arith.constant 0 : i32
    %c0_i32_0 = arith.constant 0 : i32
    %c0_i32_1 = arith.constant 0 : i32
    return %c0_i32, %c0_i32_0 : i32, i32
  }
  func.func @transform_7(%arg0: i32) -> (i32, i32) {
    %c0_i32 = arith.constant 0 : i32
    %c0_i32_0 = arith.constant 0 : i32
    %c0_i32_1 = arith.constant 0 : i32
    return %c0_i32, %c0_i32_0 : i32, i32
  }
  func.func @transform_8(%arg0: i32) -> (i32, i32) {
    %c0_i32 = arith.constant 0 : i32
    %c0_i32_0 = arith.constant 0 : i32
    %c0_i32_1 = arith.constant 0 : i32
    return %c0_i32, %c0_i32_0 : i32, i32
  }
  func.func @transform_9(%arg0: i32) -> (i32, i32) {
    %c0_i32 = arith.constant 0 : i32
    %c0_i32_0 = arith.constant 0 : i32
    return %c0_i32, %arg0 : i32, i32
  }
}

</mosaic_0001>

<bundles_post_ra>
// kernel: tpu_custom_call.1
= control target key start
LH: loop header
LB: loop body
LE: loop exit
PB: predicated region body
PF: predicated region fallthrough
CT: control target
= control target key end

     0   :  { %14 = vsyncpa [#allocation4], 0  ;;  %s1254_s0 = inlined_call_operand.vmem [shape: bf16[16,512], index: 0, kind: input, shape index: {}]   ;;  %s1255_s1 = inlined_call_operand.vmem [shape: bf16[32,16], index: 1, kind: input, shape index: {}]   ;;  %s1256_s2 = inlined_call_operand.vmem [shape: f32[32,1], index: 2, kind: input, shape index: {}]   ;;  %s1257_s3 = inlined_call_operand.vmem [shape: bf16[32,32], index: 3, kind: input, shape index: {}]   ;;  %s1258_s4 = inlined_call_operand.vmem [shape: f32[32,1], index: 4, kind: input, shape index: {}]   ;;  %s1259_s5 = inlined_call_operand.vmem [shape: bf16[32,32], index: 5, kind: input, shape index: {}]   ;;  %s1260_s6 = inlined_call_operand.vmem [shape: f32[32,1], index: 6, kind: input, shape index: {}]   ;;  %s1261_s7 = inlined_call_operand.vmem [shape: bf16[4,32], index: 7, kind: input, shape index: {}]   ;;  %s1262_s8 = inlined_call_operand.vmem [shape: f32[4,1], index: 8, kind: input, shape index: {}]   ;;  %s1263_s9 = inlined_call_operand.hbm [shape: f32[4,512], index: 9, kind: output, shape index: {}]  }
   0x1   :  { %16 = vsyncpa [#allocation4 + $0x1], 0  ;;  %s1070_s30 = smov 0   ;;  %s1072_s10 = smov 0  }
   0x2   :  { %s1074_s11 = smov 0   ;;  %s1076_s12 = smov 0  }
   0x3 LB: > { %s861_s13 = sadd.s32 4294967295, %s1016_s12   ;;  %s862_s14 = sadd.s32 4294967294, %s1016_s12   ;;  %s1016_s12 = sphi %s1076_s12, %s1269_s12   ;;  %s1012_s11 = sphi %s1074_s11, %s1268_s11   ;;  %s1008_s10 = sphi %s1072_s10, %s1267_s10   ;;  %s1004_s30 = sphi %s1070_s30, %s1266_s30  }
   0x4   : > { %s1093_s15 = sadd.s32 1, %s1016_s12   ;;  %s29_s16 = sadd.s32 1, %s1012_s11 }
   0x5   : > { %s26_s17 = ssub.s32 %s1016_s12, %s1093_s15  ;;  %p36_p0 = scmp.ne.s32.totalorder %s1012_s11, %s1008_s10 }
   0x6   : > { %p27_p1 = scmp.eq.s32.totalorder %s26_s17, 0  ;;  %p37_p2 = scmp.eq.s32.totalorder %s1016_s12, 0 }
   0x7   : > { %p234_p3 = scmp.eq.s32.totalorder %s861_s13, 1  ;;  %p239_p4 = scmp.ne.s32.totalorder %s1008_s10, %s1004_s30 }
   0x8   : > { %s1106_s18 = scalar_select %p27_p1, %s1012_s11, %s29_s16  }
   0x9   : > { %p38_p5 = por %p37_p2, %p36_p0  ;;  %p1108_p6 = por %p234_p3, %p36_p0 }
   0xa   : > { %p240_p7 = scmp.eq.s32.totalorder %s862_s14, 1  ;;  %p864_p9 = scmp.ge.s32.totalorder %s1016_s12, 2 }
   0xc   : > { %p1112_p8 = por %p240_p7, %p239_p4  ;;  %280 = sbr.rel (%p864_p9) target bundleno = 26 (0x1a), region = 48 }
  0x13   : > { %283 = sbr.rel (!%p38_p5) target bundleno = 26 (0x1a), region = 52  ;;  %s285_s21 = sand.u32 (%p38_p5), 1, %s1012_s11  }
  0x14   : > { %s893_s22 = sshll.u32 (%p38_p5), %s1016_s12, 3  ;;  %s865_s23 = sshll.u32 (%p38_p5), %s285_s21, 4 }
  0x15   : > { %s290_s26 = scalar_lea.vmem (%p38_p5), %s1254_s0, %s893_s22  ;;  %s287_s27 = scalar_lea.vmem (%p38_p5), [#allocation2], %s865_s23 }
  0x16   : > { %v320_v0 = vld [vmem:[%s290_s26] sm:$0xff] (%p38_p5)  ;;  %v322_v1 = vld [vmem:[%s290_s26 + $0x10] sm:$0xff] (%p38_p5) }
  0x17   : > { %321 = vst [vmem:[%s287_s27] sm:$0xff] (%p38_p5), %v320_v0  ;;  %323 = vst [vmem:[%s287_s27 + $0x8] sm:$0xff] (%p38_p5), %v322_v1 }
  0x1a PF: > { %p868_p10 = scmp.ge.s32.totalorder %s1016_s12, 1  ;;  %p328_p11 = scmp.lt.s32.totalorder %s1016_s12, 3 }
  0x1c   : > { %p329_p12 = pnand %p868_p10, %p328_p11 }
  0x1d   : > { %s1127_s28 = sand.u32 (!%p329_p12), 1, %s1008_s10   ;;  %v1018_v2 = vmov (!%p329_p12), 0   ;;  %v379_v3 = vld [vmem:[%s1256_s2] sm:$0xff] (!%p329_p12)  ;;  %v380_v6 = vld [vmem:[%s1256_s2 + $0x8] sm:$0xff] (!%p329_p12)  ;;  %v381_v7 = vld [vmem:[%s1256_s2 + $0x10] sm:$0xff] (!%p329_p12)  ;;  %vm423_vm0 = vcmask (!%p329_p12), 130048  }
  0x1e   : > { %332 = sbr.rel (%p329_p12) target bundleno = 993 (0x3e1), region = 90  ;;  %s869_s29 = sshll.u32 (!%p329_p12), %s1127_s28, 4  ;;  %462 = vmatprep.mubr.bf16.mxu0 (!%p329_p12), %v1018_v2  ;;  %935 = vset.pattern.permute.xlu0 (!%p329_p12), %v1018_v2  ;;  %v940_v8 = vld [vmem:[%s1255_s1] sm:$0xff] (!%p329_p12)   ;;  %v382_v9 = vld [vmem:[%s1256_s2 + $0x18] sm:$0xff] (!%p329_p12)  ;;  %v500_v11 = vld [vmem:[%s1258_s4 + $0x8] sm:$0xff] (!%p329_p12)  ;;  %vm533_vm1 = vcmask (!%p329_p12), 261120  }
  0x1f   : > { %936 = vset.pattern.permute.xlu1 (!%p329_p12), %v1018_v2  ;;  %572 = vmatprep.mubr.bf16.mxu1 (!%p329_p12), %v1018_v2  ;;  %s337_s17 = scalar_lea.vmem (!%p329_p12), [#allocation2], %s869_s29  ;;  %v499_v10 = vld [vmem:[%s1258_s4] sm:$0xff] (!%p329_p12)  ;;  %v501_v12 = vld [vmem:[%s1258_s4 + $0x10] sm:$0xff] (!%p329_p12)  ;;  %v941_v13 = vld [vmem:[%s1255_s1 + $0x8] sm:$0xff] (!%p329_p12)   ;;  %s870_s26 = sshll.u32 (!%p329_p12), %s1127_s28, 3 }
  0x20   : > { %v937_v4 = vld [vmem:[%s337_s17 + $0x4] ss:$8 sps:$4 sm:$0xff] (!%p329_p12)   ;;  %385 = vperm.xlu0 (!%p329_p12), %935, %v379_v3   ;;  %v939_v5 = vld [vmem:[%s337_s17] ss:$8 sps:$4 sm:$0xff] (!%p329_p12)   ;;  %395 = vperm.xlu1 (!%p329_p12), %936, %v381_v7   ;;  %s894_s27 = sshll.u32 (!%p329_p12), %s861_s13, 7  ;;  %s369_s29 = scalar_lea.vmem (!%p329_p12), [#allocation3], %s870_s26 }
  0x21   : > { %430 = vmatprep.subr.bf16.mxu0 (!%p329_p12), %v937_v4  ;;  %v502_v14 = vld [vmem:[%s1258_s4 + $0x18] sm:$0xff] (!%p329_p12)  ;;  %v609_v15 = vld [vmem:[%s1260_s6] sm:$0xff] (!%p329_p12)  ;;  %v610_v16 = vld [vmem:[%s1260_s6 + $0x8] sm:$0xff] (!%p329_p12)  ;;  %s797_s14 = sshll.u32 (!%p329_p12), %s369_s29, 4  ;;  %s1210_s21 = scalar_lea.hbm (!%p329_p12), %s1263_s9, %s894_s27  ;;  %s1212_s14 = int_to_ptr.vmem [resolvable:$true] %s797_s14 }
  0x22   : > { %431 = vmatpush1.bf16.msra.mxu0 (!%p329_p12), %v939_v5  ;;  %v611_v17 = vld [vmem:[%s1260_s6 + $0x10] sm:$0xff] (!%p329_p12)  ;;  %v612_v18 = vld [vmem:[%s1260_s6 + $0x18] sm:$0xff] (!%p329_p12)  ;;  %v715_v19 = vld [vmem:[%s1262_s8] sm:$0xf] (!%p329_p12)  ;;  %s783_s22 = scalar_lea.sflag (!%p329_p12), [#allocation4], %s1127_s28  ;;  %s954_s23 = scalar_lea.vmem (!%p329_p12), %s1212_s14, 128 }
  0x23   : > { %v942_v52 = vld [vmem:[%s1257_s3] sm:$0xff] (!%p329_p12)   ;;  %v943_v53 = vld [vmem:[%s1257_s3 + $0x8] sm:$0xff] (!%p329_p12)   ;;  %p955_p13 = scmp.ne.s32.totalorder (!%p329_p12), %s1212_s14, %s954_s23  ;;  %s1019_s13 = smov (!%p329_p12), [#allocation3]  }
  0x24   : > { %390 = vperm.xlu0 (!%p329_p12), %935, %v380_v6   ;;  %400 = vperm.xlu1 (!%p329_p12), %936, %v382_v9   ;;  %s958_s24 = sshll.u32 (!%p329_p12), %s1019_s13, 4  ;;  %s959_s24 = int_to_ptr.vmem [resolvable:$false] %s958_s24 }
  0x25   : > { %875 = vmatmul.mubr.msk.bf16.vlgmr.msra.gmra.mrb[0].mxu0 %vm423_vm0, %v940_v8  ;;  %p956_p0 = pnand %p955_p13, %p1108_p6  ;;  %s960_s25 = scalar_lea.vmem %s959_s24, 256 }
  0x26   : > { %472 = vmatprep.mubr.bf16.mxu0 %v1018_v2  ;;  %p961_p2 = scmp.lt.s32.totalorder %s1212_s14, %s959_s24  ;;  %p962_p3 = scmp.lt.s32.totalorder %s960_s25, %s954_s23 }
  0x27   : > { %p957_p1 = pneg %p956_p0 }
  0x28   : > { %505 = vperm.xlu0 %935, %v499_v10   ;;  %510 = vperm.xlu1 %936, %v500_v11   ;;  %p963_p4 = por %p962_p3, %p961_p2 }
  0x2a   : > { %p964_p5 = pnand %p963_p4, %p957_p1 }
  0x2c   : > { %515 = vperm.xlu0 %935, %v501_v12   ;;  %520 = vperm.xlu1 %936, %v502_v14  }
  0x2d   : > { %876 = vmatmul.mubr.msk.bf16.gmra.mrb[4].mxu0 %vm423_vm0, %v941_v13 }
  0x2e   : > { %681 = vmatprep.mubr.bf16.mxu0 %v1018_v2 }
  0x30   : > { %615 = vperm.xlu0 %935, %v609_v15   ;;  %620 = vperm.xlu1 %936, %v610_v16  }
  0x34   : > { %625 = vperm.xlu0 %935, %v611_v17   ;;  %630 = vperm.xlu1 %936, %v612_v18  }
  0x38   : > { %718 = vperm.xlu0 %935, %v715_v19  }
  0x9f   : > { %v386_v20 = vpop.permute.xlu0 %385  ;;  %v396_v29 = vpop.permute.xlu1 %395 }
  0xa3   : > { %v391_v24 = vpop.permute.xlu0 %390  ;;  %v401_v40 = vpop.permute.xlu1 %400 }
  0xa7   : > { %v506_v54 = vpop.permute.xlu0 %505  ;;  %v511_v58 = vpop.permute.xlu1 %510 }
  0xab   : > { %v516_v6 = vpop.permute.xlu0 %515  ;;  %v521_v11 = vpop.permute.xlu1 %520 }
  0xf8   : > { %v464_v21 = vpop.f32.mrb[0].mxu0 }
  0xf9   : > { %v465_v22 = vadd.f32 %v464_v21, %v386_v20  ;;  %v466_v23 = vpop.f32.mrb[1].mxu0 }
  0xfa   : > { %v467_v25 = vadd.f32 %v466_v23, %v386_v20  ;;  %v468_v26 = vpop.f32.mrb[2].mxu0  ;;  %v944_v23 = vld [vmem:[%s1259_s5] sm:$0xff]  }
  0xfb   : > { %v469_v27 = vadd.f32 %v468_v26, %v391_v24  ;;  %v470_v28 = vpop.f32.mrb[3].mxu0  ;;  %v483_v31 = vmax.f32 %v465_v22, 0.0 }
  0xfc   : > { %v471_v30 = vadd.f32 %v470_v28, %v391_v24  ;;  %v484_v33 = vmax.f32 %v467_v25, 0.0  ;;  %v945_v24 = vld [vmem:[%s1259_s5 + $0x8] sm:$0xff]   ;;  %v616_v25 = vpop.permute.xlu0 %615 }
  0xfd   : > { %v485_v32 = vmax.f32 %v469_v27, 0.0 }
  0xfe   : > { %v486_v34 = vmax.f32 %v471_v30, 0.0 }
  0xff   : > { %v495_v35 = vpack.c.bf16 %v485_v32, %v483_v31 }
 0x100   : > { %v474_v36 = vpop.f32.mrb[4].mxu0  ;;  %v496_v37 = vpack.c.bf16 %v486_v34, %v484_v33 }
 0x101   : > { %v475_v38 = vadd.f32 %v474_v36, %v396_v29  ;;  %v476_v39 = vpop.f32.mrb[5].mxu0 }
 0x102   : > { %v477_v41 = vadd.f32 %v476_v39, %v396_v29  ;;  %v478_v42 = vpop.f32.mrb[6].mxu0  ;;  %540 = vmatprep.subr.bf16.mxu1 %v496_v37  ;;  %v621_v29 = vpop.permute.xlu1 %620 }
 0x103   : > { %v479_v43 = vadd.f32 %v478_v42, %v401_v40  ;;  %v480_v44 = vpop.f32.mrb[7].mxu0  ;;  %541 = vmatpush1.bf16.msra.mxu1 %v495_v35  ;;  %v487_v46 = vmax.f32 %v475_v38, 0.0  ;;  %v626_v39 = vpop.permute.xlu0 %625 }
 0x104   : > { %v481_v45 = vadd.f32 %v480_v44, %v401_v40  ;;  %v488_v48 = vmax.f32 %v477_v41, 0.0 }
 0x105   : > { %v489_v47 = vmax.f32 %v479_v43, 0.0 }
 0x106   : > { %v490_v49 = vmax.f32 %v481_v45, 0.0  ;;  %v631_v44 = vpop.permute.xlu1 %630 }
 0x107   : > { %v497_v50 = vpack.c.bf16 %v489_v47, %v487_v46 }
 0x108   : > { %v498_v51 = vpack.c.bf16 %v490_v49, %v488_v48 }
 0x10a   : > { %542 = vmatprep.subr.bf16.mxu1 %v498_v51 }
 0x10b   : > { %543 = vmatpush1.bf16.msra.mxu1 %v497_v50 }
 0x10e   : > { %879 = vmatmul.mubr.msk.bf16.vlgmr.msra.gmra.mrb[0].mxu1 %vm533_vm1, %v942_v52 }
 0x10f   : > { %582 = vmatprep.mubr.bf16.mxu1 %v1018_v2 }
 0x116   : > { %880 = vmatmul.mubr.msk.bf16.gmra.mrb[4].mxu1 %vm533_vm1, %v943_v53 }
 0x117   : > { %756 = vmatprep.mubr.bf16.mxu1 %v1018_v2 }
 0x1e1   : > { %v574_v55 = vpop.f32.mrb[0].mxu1 }
 0x1e2   : > { %v575_v56 = vadd.f32 %v574_v55, %v506_v54  ;;  %v576_v57 = vpop.f32.mrb[1].mxu1 }
 0x1e3   : > { %v577_v59 = vadd.f32 %v576_v57, %v506_v54  ;;  %v578_v60 = vpop.f32.mrb[2].mxu1  ;;  %v719_v57 = vpop.permute.xlu0 %718 }
 0x1e4   : > { %v579_v61 = vadd.f32 %v578_v60, %v511_v58  ;;  %v580_v62 = vpop.f32.mrb[3].mxu1  ;;  %v593_v0 = vmax.f32 %v575_v56, 0.0  ;;  %v710_v56 = vld [vmem:[%s1261_s7] sm:$0x3] }
 0x1e5   : > { %v581_v63 = vadd.f32 %v580_v62, %v511_v58  ;;  %v594_v3 = vmax.f32 %v577_v59, 0.0 }
 0x1e6   : > { %v595_v1 = vmax.f32 %v579_v61, 0.0 }
 0x1e7   : > { %v596_v4 = vmax.f32 %v581_v63, 0.0 }
 0x1e8   : > { %v605_v5 = vpack.c.bf16 %v595_v1, %v593_v0 }
 0x1e9   : > { %v606_v7 = vpack.c.bf16 %v596_v4, %v594_v3  ;;  %v584_v8 = vpop.f32.mrb[4].mxu1 }
 0x1ea   : > { %v585_v9 = vadd.f32 %v584_v8, %v516_v6  ;;  %v586_v10 = vpop.f32.mrb[5].mxu1 }
 0x1eb   : > { %v587_v12 = vadd.f32 %v586_v10, %v516_v6  ;;  %v588_v13 = vpop.f32.mrb[6].mxu1  ;;  %649 = vmatprep.subr.bf16.mxu0 %v606_v7 }
 0x1ec   : > { %v589_v14 = vadd.f32 %v588_v13, %v521_v11  ;;  %v590_v15 = vpop.f32.mrb[7].mxu1  ;;  %650 = vmatpush1.bf16.msra.mxu0 %v605_v5  ;;  %v597_v17 = vmax.f32 %v585_v9, 0.0 }
 0x1ed   : > { %v591_v16 = vadd.f32 %v590_v15, %v521_v11  ;;  %v598_v19 = vmax.f32 %v587_v12, 0.0 }
 0x1ee   : > { %v599_v18 = vmax.f32 %v589_v14, 0.0 }
 0x1ef   : > { %v600_v20 = vmax.f32 %v591_v16, 0.0 }
 0x1f0   : > { %v607_v21 = vpack.c.bf16 %v599_v18, %v597_v17 }
 0x1f1   : > { %v608_v22 = vpack.c.bf16 %v600_v20, %v598_v19 }
 0x1f3   : > { %651 = vmatprep.subr.bf16.mxu0 %v608_v22 }
 0x1f4   : > { %652 = vmatpush1.bf16.msra.mxu0 %v607_v21 }
 0x1f7   : > { %883 = vmatmul.mubr.msk.bf16.vlgmr.msra.gmra.mrb[8].mxu0 %vm533_vm1, %v944_v23 }
 0x1f8   : > { %691 = vmatprep.mubr.bf16.mxu0 %v1018_v2 }
 0x1ff   : > { %884 = vmatmul.mubr.msk.bf16.gmra.mrb[12].mxu0 %vm533_vm1, %v945_v24 }
 0x2ca   : > { %v683_v26 = vpop.f32.mrb[8].mxu0 }
 0x2cb   : > { %v684_v27 = vadd.f32 %v683_v26, %v616_v25  ;;  %v685_v28 = vpop.f32.mrb[9].mxu0 }
 0x2cc   : > { %v686_v30 = vadd.f32 %v685_v28, %v616_v25  ;;  %v687_v31 = vpop.f32.mrb[10].mxu0 }
 0x2cd   : > { %v688_v32 = vadd.f32 %v687_v31, %v621_v29  ;;  %v689_v33 = vpop.f32.mrb[11].mxu0  ;;  %v702_v35 = vmax.f32 %v684_v27, 0.0 }
 0x2ce   : > { %v690_v34 = vadd.f32 %v689_v33, %v621_v29  ;;  %v703_v37 = vmax.f32 %v686_v30, 0.0 }
 0x2cf   : > { %v704_v36 = vmax.f32 %v688_v32, 0.0 }
 0x2d0   : > { %v705_v2 = vmax.f32 %v690_v34, 0.0 }
 0x2d1   : > { %v711_v38 = vpack.c.bf16 %v704_v36, %v702_v35 }
 0x2d2   : > { %v712_v40 = vpack.c.bf16 %v705_v2, %v703_v37  ;;  %v693_v41 = vpop.f32.mrb[12].mxu0 }
 0x2d3   : > { %v694_v42 = vadd.f32 %v693_v41, %v626_v39  ;;  %v695_v43 = vpop.f32.mrb[13].mxu0 }
 0x2d4   : > { %v696_v45 = vadd.f32 %v695_v43, %v626_v39  ;;  %v697_v46 = vpop.f32.mrb[14].mxu0  ;;  %724 = vmatprep.subr.bf16.mxu1 %v712_v40 }
 0x2d5   : > { %v698_v47 = vadd.f32 %v697_v46, %v631_v44  ;;  %v699_v48 = vpop.f32.mrb[15].mxu0  ;;  %725 = vmatpush1.bf16.msra.mxu1 %v711_v38  ;;  %v706_v50 = vmax.f32 %v694_v42, 0.0 }
 0x2d6   : > { %v700_v49 = vadd.f32 %v699_v48, %v631_v44  ;;  %v707_v52 = vmax.f32 %v696_v45, 0.0 }
 0x2d7   : > { %v708_v51 = vmax.f32 %v698_v47, 0.0 }
 0x2d8   : > { %v709_v53 = vmax.f32 %v700_v49, 0.0 }
 0x2d9   : > { %v713_v54 = vpack.c.bf16 %v708_v51, %v706_v50 }
 0x2da   : > { %v714_v55 = vpack.c.bf16 %v709_v53, %v707_v52 }
 0x2dc   : > { %726 = vmatprep.subr.bf16.mxu1 %v714_v55 }
 0x2dd   : > { %727 = vmatpush1.bf16.msra.mxu1 %v713_v54 }
 0x2e0   : > { %885 = vmatmul.mubr.msk.bf16.vlgmr.msra.gmra.mrb[8].mxu1 %vm533_vm1, %v710_v56 }
 0x3b3   : > { %v758_v58 = vpop.f32.mrb[8].mxu1 }
 0x3b4   : > { %v759_v59 = vadd.f32 %v758_v58, %v719_v57  ;;  %v760_v60 = vpop.f32.mrb[9].mxu1 }
 0x3b5   : > { %v761_v61 = vadd.f32 %v760_v60, %v719_v57  ;;  %v762_v62 = vpop.f32.mrb[10].mxu1 }
 0x3b6   : > { %v886_v63 = vmul.f32 -1.442695, %v759_v59  ;;  %v763_v0 = vpop.f32.mrb[11].mxu1 }
 0x3b7   : > { %v887_v1 = vmul.f32 -1.442695, %v761_v61 }
 0x3b8   : > { %946 = vpow2.f32 %v886_v63 }
 0x3b9   : > { %948 = vpow2.f32 %v887_v1 }
 0x3c2   : > { %v947_v3 = vpop.eup %946 }
 0x3c3   : > { %v949_v4 = vpop.eup %948  ;;  %v771_v5 = vadd.f32 1.0, %v947_v3 }
 0x3c4   : > { %v772_v6 = vadd.f32 1.0, %v949_v4 }
 0x3c5   : > { %950 = vrcp.f32 %v771_v5 }
 0x3c6   : > { %952 = vrcp.f32 %v772_v6 }
 0x3cf   : > { %v951_v7 = vpop.eup %950 }
 0x3d0   : > { %v953_v8 = vpop.eup %952 }
 0x3d1   : > { %v779_v9 = vcombine.low %v951_v7, %v953_v8 }
 0x3d3   : > { %781 = vst [vmem:[%s369_s29] sm:$0xff] %v779_v9 }
 0x3d4   : > { %967 = shalt.err (!%p964_p5)
}
 0x3d5   : > { %s968_s28 = scalar_lea.hbm %s1210_s21, 128  ;;  %s972_s29 = scalar_lea.hbm %s1263_s9, 256 }
 0x3d6   : > { %p969_p7 = scmp.ne.s32.totalorder %s1210_s21, %s968_s28  ;;  %p973_p12 = scmp.lt.u32.totalorder %s1210_s21, %s1263_s9 }
 0x3d7   : > { %p974_p13 = scmp.lt.u32.totalorder %s972_s29, %s968_s28  ;;  %p976_p1 = scmp.lt.u32.totalorder %s968_s28, %s1210_s21 }
 0x3d8   : > { %p970_p10 = pnand %p969_p7, %p1108_p6 }
 0x3d9   : > { %p975_p0 = por %p974_p13, %p973_p12 }
 0x3da   : > { %p971_p11 = pneg %p970_p10 }
 0x3db   : > { %p977_p2 = por %p976_p1, %p975_p0 }
 0x3dd   : > { %p978_p3 = pnand %p977_p2, %p971_p11 }
 0x3df   : > { %981 = shalt.err (!%p978_p3)
}
 0x3e0   : > { %895 = dma.vmem_to_hbm [thread:$0]  (%p1108_p6), %s1212_s14, 128, %s1210_s21, %s783_s22  }
 0x3e1 PF: > { %s809_s23 = sand.u32 1, %s1004_s30   ;;  %p898_p4 = pnand %p864_p9, %p1112_p8 }
 0x3e2   : > { %s810_s13 = scalar_lea.sflag [#allocation4], %s809_s23 }
 0x3e3   : > { %999 = dma.done.wait (!%p898_p4), %s810_s13, 128  }
 0x3e4   : > { %1001 = vsyncadd (!%p898_p4), %s810_s13, 4294967168  ;;  %p19_p5 = scmp.ge.s32.totalorder %s1093_s15, 4   ;;  %s1266_s30 = smov %s1008_s10 }
 0x3e5   : > { %s1267_s10 = smov %s1012_s11  ;;  %s1268_s11 = smov %s1106_s18 }
 0x3e6   : > { %s1269_s12 = smov %s1093_s15  ;;  %21 = sbr.rel (!%p19_p5) target bundleno = 3 (0x3), region = 134 }
 0x3ed   :  { %815 = vsyncpa [#allocation4], 1 }
 0x3ee   :  { %817 = vsyncpa [#allocation4 + $0x1], 1 }

</bundles_post_ra>
